<compile_context>
chip_gen: v7x
topology: tpu7x:2x2x1
jax: 0.10.0
libtpu: 0.0.40
codegen_flags: <defaults>
</compile_context>

<pallas_src>
import functools

import jax
import jax.numpy as jnp
from jax import lax
from jax.experimental import pallas as pl
from jax.experimental.pallas import tpu as pltpu

EPS = 1e-5
_LANE = 128
_FULL_DIM_MAX = 2048          # ragged H above this falls back to padding
_VMEM_LIMIT = 32 * 1024 * 1024


def _pick_tile(dim, candidates):
    """Largest candidate tile that evenly divides `dim`, else the full dim."""
    for c in candidates:
        if dim >= c and dim % c == 0:
            return c
    return dim


# ---------------------------------------------------------------------------
# Pass 1: global sum of squares.
#   VPU-only elementwise accumulation into a VMEM scratch; one reduce per row
#   block; per-row-block partial outputs (i "parallel" -> megacore friendly).
# ---------------------------------------------------------------------------
def _ssq_kernel(x_ref, out_ref, acc_ref):
    j = pl.program_id(1)

    @pl.when(j == 0)
    def _():
        acc_ref[...] = jnp.zeros_like(acc_ref)

    x = x_ref[...].astype(jnp.float32)   # f32 accumulation (bf16-safe)
    acc_ref[...] += x * x                # pure VPU per step

    @pl.when(j == pl.num_programs(1) - 1)
    def _():
        out_ref[0, 0] = jnp.sum(acc_ref[...])   # single XLU reduce per row block


def _sum_of_squares(x):
    B, H = x.shape
    tm = _pick_tile(B, (512, 256, 128, 64, 32, 16, 8))
    tk = _pick_tile(H, (2048, 1024, 512, 256, 128))
    gi, gj = B // tm, H // tk
    partials = pl.pallas_call(
        _ssq_kernel,
        out_shape=jax.ShapeDtypeStruct((gi, 1), jnp.float32),
        grid_spec=pltpu.PrefetchScalarGridSpec(
            num_scalar_prefetch=0,
            grid=(gi, gj),
            in_specs=[pl.BlockSpec((tm, tk), lambda i, j: (i, j))],
            out_specs=pl.BlockSpec(
                (1, 1), lambda i, j: (i, 0), memory_space=pltpu.MemorySpace.SMEM
            ),
            scratch_shapes=[pltpu.VMEM((tm, tk), jnp.float32)],
        ),
        compiler_params=pltpu.CompilerParams(
            dimension_semantics=("parallel", "arbitrary"),
            vmem_limit_bytes=_VMEM_LIMIT,
        ),
    )(x)
    # Tiny pairwise finish in the wrapper (also fixes long serial-accumulation
    # precision drift of the old single-scalar version).
    return jnp.sum(partials)


# ---------------------------------------------------------------------------
# Pass 2a: normalize only (expected_shape is None).
# ---------------------------------------------------------------------------
def _rms_only_kernel(scale_ref, x_ref, o_ref, *, eps):
    x = x_ref[...].astype(jnp.float32)
    o_ref[...] = (x * scale_ref[0, 0] + eps).astype(o_ref.dtype)


# ---------------------------------------------------------------------------
# Pass 2b: normalize + nn.Linear.
#   Raw native-dtype tiles into the MXU; scale + effective bias applied only in
#   the K-finalize branch (eps folded into b_eff in prepare_rms_linear).
# ---------------------------------------------------------------------------
def _rms_matmul_kernel(scale_ref, x_ref, wt_ref, beff_ref, o_ref, acc_ref):
    @pl.when(pl.program_id(2) == 0)
    def _():
        acc_ref[...] = jnp.zeros_like(acc_ref)

    acc_ref[...] += jnp.dot(
        x_ref[...], wt_ref[...], preferred_element_type=jnp.float32
    )

    @pl.when(pl.program_id(2) == pl.num_programs(2) - 1)
    def _():
        o_ref[...] = (
            acc_ref[...] * scale_ref[0, 0] + beff_ref[...]
        ).astype(o_ref.dtype)


# ---------------------------------------------------------------------------
# One-time (hoisted) weight preparation.
# ---------------------------------------------------------------------------
def prepare_rms_linear(weight, bias, eps=EPS):
    """Prepare nn.Linear params once (hoisted out of the per-call path).

    Uses the identity  (x*s + eps) @ W.T + b == s*(x @ W.T) + b_eff
    with b_eff = b + eps * W.sum(axis=1), so the kernel consumes raw x tiles.
    """
    H = weight.shape[0]
    wt = weight.T                                                  # (K, N)
    b_eff = bias.astype(jnp.float32) + jnp.float32(eps) * jnp.sum(
        weight.astype(jnp.float32), axis=1
    )
    pad = 0
    if H % _LANE != 0 and H > _FULL_DIM_MAX:
        # Only very large ragged hidden dims get padded (done once, here).
        Hp = ((H + _LANE - 1) // _LANE) * _LANE
        pad = Hp - H
        wt = jnp.pad(wt, ((0, pad), (0, pad)))
        b_eff = jnp.pad(b_eff, (0, pad))
    return {"wt": wt, "b_eff": b_eff.reshape(1, -1), "H": H, "pad": pad}


# ---------------------------------------------------------------------------
# Wrapper
# ---------------------------------------------------------------------------
def rms_layer_norm(x, weight=None, bias=None, eps=EPS, *, prepared=None):
    """Pallas implementation of RMSLayerNorm.forward.

    x:        (B, H)
    weight:   (H, H) nn.Linear weight, or None
    bias:     (H,)   nn.Linear bias,   or None
    prepared: optional result of prepare_rms_linear(weight, bias, eps),
              to reuse the one-time weight prep across calls.
    """
    B, H = x.shape
    out_dtype = x.dtype

    # Pass 1: global sum of squares -> single scalar scale, handed to pass 2
    # through SMEM (pass 2 never re-reads x for the reduction).
    ssq = _sum_of_squares(x)
    scale = lax.rsqrt(ssq / jnp.float32(B)).reshape(1, 1).astype(jnp.float32)

    if weight is None and prepared is None:
        # Normalize-only path: purely HBM-bound; widest lane-dense blocks.
        tm = _pick_tile(B, (512, 256, 128, 64, 32, 16, 8))
        tn = _pick_tile(H, (2048, 1024, 512, 256, 128))
        return pl.pallas_call(
            functools.partial(_rms_only_kernel, eps=eps),
            out_shape=jax.ShapeDtypeStruct((B, H), out_dtype),
            grid_spec=pltpu.PrefetchScalarGridSpec(
                num_scalar_prefetch=0,
                grid=(B // tm, H // tn),
                in_specs=[
                    pl.BlockSpec(
                        (1, 1),
                        lambda i, j: (0, 0),
                        memory_space=pltpu.MemorySpace.SMEM,
                    ),
                    pl.BlockSpec((tm, tn), lambda i, j: (i, j)),
                ],
                out_specs=pl.BlockSpec((tm, tn), lambda i, j: (i, j)),
            ),
            compiler_params=pltpu.CompilerParams(
                dimension_semantics=("parallel", "parallel"),
                vmem_limit_bytes=_VMEM_LIMIT,
            ),
        )(scale, x)

    if prepared is None:
        prepared = prepare_rms_linear(weight, bias, eps)
    wt, b_eff, pad = prepared["wt"], prepared["b_eff"], prepared["pad"]
    Hp = H + pad

    # TODO(synk): for hot shapes with huge ragged H, replace this per-call
    # activation pad / output slice with a masked last-K/N tile.
    xp = jnp.pad(x, ((0, 0), (0, pad))) if pad else x

    tm = _pick_tile(B, (256, 128, 64, 32, 16, 8))
    tn = _pick_tile(Hp, (1024, 512, 256, 128))
    tk = _pick_tile(Hp, (1024, 512, 256, 128))

    out = pl.pallas_call(
        _rms_matmul_kernel,
        out_shape=jax.ShapeDtypeStruct((B, Hp), out_dtype),
        grid_spec=pltpu.PrefetchScalarGridSpec(
            num_scalar_prefetch=0,
            grid=(B // tm, Hp // tn, Hp // tk),
            in_specs=[
                pl.BlockSpec(
                    (1, 1),
                    lambda i, j, k: (0, 0),
                    memory_space=pltpu.MemorySpace.SMEM,
                ),
                pl.BlockSpec((tm, tk), lambda i, j, k: (i, k)),
                pl.BlockSpec((tk, tn), lambda i, j, k: (k, j)),
                pl.BlockSpec((1, tn), lambda i, j, k: (0, j)),
            ],
            out_specs=pl.BlockSpec((tm, tn), lambda i, j, k: (i, j)),
            scratch_shapes=[pltpu.VMEM((tm, tn), jnp.float32)],
        ),
        compiler_params=pltpu.CompilerParams(
            dimension_semantics=("parallel", "parallel", "arbitrary"),
            vmem_limit_bytes=_VMEM_LIMIT,
        ),
    )(scale, xp, wt, b_eff)
    return out[:, :H] if pad else out


def _reference(x, weight, bias, eps=EPS):
    k = x / jnp.sqrt(jnp.sum(x**2) / x.shape[0]) + eps
    if weight is None:
        return k
    return k @ weight.T + bias


if __name__ == "__main__":
    key = jax.random.PRNGKey(0)
    kx, kw, kb = jax.random.split(key, 3)

    # Small shapes matching the module: expected_shape = 32 (hidden of nn.Linear).
    B, H = 8, 32
    x = jax.random.normal(kx, (B, H), dtype=jnp.float32)
    bound = 1.0 / jnp.sqrt(jnp.float32(H))
    weight = jax.random.uniform(kw, (H, H), jnp.float32, -bound, bound)
    bias = jax.random.uniform(kb, (H,), jnp.float32, -bound, bound)

    # One-time weight prep (hoisted), reused across forward calls.
    prepared = prepare_rms_linear(weight, bias)
    out = jax.block_until_ready(rms_layer_norm(x, prepared=prepared))
    ref = _reference(x, weight, bias)
    assert out.shape == (B, H)
    assert jnp.allclose(out, ref, atol=1e-5, rtol=1e-5), "linear path mismatch"

    # expected_shape=None path (normalize only).
    out2 = jax.block_until_ready(rms_layer_norm(x, None, None))
    assert jnp.allclose(
        out2, _reference(x, None, None), atol=1e-5, rtol=1e-5
    ), "norm-only path mismatch"

    # Exercise the multi-block tiled path (K/N grid > 1, accumulator revisits).
    kx2, kw2, kb2 = jax.random.split(jax.random.PRNGKey(0), 3)
    B2, H2 = 16, 384
    x2 = jax.random.normal(kx2, (B2, H2), dtype=jnp.float32)
    b2 = 1.0 / jnp.sqrt(jnp.float32(H2))
    w2 = jax.random.uniform(kw2, (H2, H2), jnp.float32, -b2, b2)
    bb2 = jax.random.uniform(kb2, (H2,), jnp.float32, -b2, b2)
    out3 = jax.block_until_ready(rms_layer_norm(x2, w2, bb2))
    assert jnp.allclose(
        out3, _reference(x2, w2, bb2), atol=1e-4, rtol=1e-4
    ), "tiled path mismatch"

    print("KERNEL_OK")
</pallas_src>

<mosaic_0001>
module attributes {stable_mosaic.version = 11 : i64} {
  func.func @_ssq_kernel(%arg0: i32, %arg1: i32, %arg2: memref<8x32xf32, #tpu.memory_space<vmem>>, %arg3: memref<1x1xf32, #tpu.memory_space<smem>>, %arg4: memref<8x32xf32, #tpu.memory_space<vmem>>) attributes {dimension_semantics = [#tpu.dimension_semantics<parallel>, #tpu.dimension_semantics<arbitrary>], iteration_bounds = array<i64: 1, 1>, scalar_prefetch = 0 : i64, scratch_operands = 1 : i64, tpu.core_type = #tpu.core_type<tc>, window_params = [{transform_indices = @transform_0, window_bounds = array<i64: 8, 32>}, {transform_indices = @transform_1, window_bounds = array<i64: 1, 1>}]} {
    %c0_i32 = arith.constant 0 : i32
    %0 = arith.cmpi eq, %arg1, %c0_i32 : i32
    %1 = arith.extui %0 : i1 to i32
    %c0_i32_0 = arith.constant 0 : i32
    %2 = arith.cmpi ne, %1, %c0_i32_0 : i32
    scf.if %2 {
      %cst = arith.constant 0.000000e+00 : f32
      %11 = vector.broadcast %cst : f32 to vector<8x32xf32>
      %c0_8 = arith.constant 0 : index
      %c0_9 = arith.constant 0 : index
      %12 = vector.load %arg4[%c0_8, %c0_9] : memref<8x32xf32, #tpu.memory_space<vmem>>, vector<8x32xf32>
      tpu.vector_store %arg4[%c0_8, %c0_9], %11 {strides = array<i32>} : memref<8x32xf32, #tpu.memory_space<vmem>>, vector<8x32xf32>,
    } else {
    }
    %c0 = arith.constant 0 : index
    %c0_1 = arith.constant 0 : index
    %3 = vector.load %arg2[%c0, %c0_1] : memref<8x32xf32, #tpu.memory_space<vmem>>, vector<8x32xf32>
    %c0_2 = arith.constant 0 : index
    %c0_3 = arith.constant 0 : index
    %4 = vector.load %arg4[%c0_2, %c0_3] : memref<8x32xf32, #tpu.memory_space<vmem>>, vector<8x32xf32>
    %5 = arith.mulf %3, %3 : vector<8x32xf32>
    %6 = arith.addf %4, %5 : vector<8x32xf32>
    %c0_4 = arith.constant 0 : index
    %c0_5 = arith.constant 0 : index
    %7 = vector.load %arg4[%c0_4, %c0_5] : memref<8x32xf32, #tpu.memory_space<vmem>>, vector<8x32xf32>
    tpu.vector_store %arg4[%c0_4, %c0_5], %6 {strides = array<i32>} : memref<8x32xf32, #tpu.memory_space<vmem>>, vector<8x32xf32>,
    %c0_i32_6 = arith.constant 0 : i32
    %8 = arith.cmpi eq, %arg1, %c0_i32_6 : i32
    %9 = arith.extui %8 : i1 to i32
    %c0_i32_7 = arith.constant 0 : i32
    %10 = arith.cmpi ne, %9, %c0_i32_7 : i32
    scf.if %10 {
      %c0_8 = arith.constant 0 : index
      %c0_9 = arith.constant 0 : index
      %11 = vector.load %arg4[%c0_8, %c0_9] : memref<8x32xf32, #tpu.memory_space<vmem>>, vector<8x32xf32>
      %12 = vector.shape_cast %11 : vector<8x32xf32> to vector<1x8x32xf32>
      %cst = arith.constant dense<0.000000e+00> : vector<1xf32>
      %13 = vector.multi_reduction <add>, %12, %cst [1, 2] : vector<1x8x32xf32> to vector<1xf32>
      %14 = vector.shape_cast %13 : vector<1xf32> to vector<1x1x1xf32>
      %15 = vector.extract %14[0, 0, 0] : f32 from vector<1x1x1xf32>
      %c0_10 = arith.constant 0 : index
      %c0_11 = arith.constant 0 : index
      %16 = memref.load %arg3[%c0_10, %c0_11] : memref<1x1xf32, #tpu.memory_space<smem>>
      memref.store %15, %arg3[%c0_10, %c0_11] : memref<1x1xf32, #tpu.memory_space<smem>>
    } else {
    }
    return
  }
  func.func @transform_0(%arg0: i32, %arg1: i32) -> (i32, i32) {
    %c0_i32 = arith.constant 0 : i32
    return %arg0, %arg1 : i32, i32
  }
  func.func @transform_1(%arg0: i32, %arg1: i32) -> (i32, i32) {
    %c0_i32 = arith.constant 0 : i32
    %c0_i32_0 = arith.constant 0 : i32
    return %arg0, %c0_i32 : i32, i32
  }
}

</mosaic_0001>

<bundles_post_ra>
// kernel: tpu_custom_call.1
= control target key start
LH: loop header
LB: loop body
LE: loop exit
PB: predicated region body
PF: predicated region fallthrough
CT: control target
= control target key end

     0   :  { %6 = vsyncpa [#allocation4], 0  ;;  %s141_s0 = inlined_call_operand.hbm [shape: f32[8,32], index: 0, kind: input, shape index: {}]   ;;  %s142_s1 = inlined_call_operand.hbm [shape: f32[1,1], index: 1, kind: output, shape index: {}]  }
   0x1   :  { %7 = vsyncpa [#allocation5], 0  ;;  %s104_s6 = smov [#allocation3]   ;;  %s68_s10 = scalar_lea.hbm %s141_s0, 128 }
   0x2   :  { %s14_s7 = sshll.u32 %s104_s6, 4  ;;  %p69_p0 = scmp.ne.s32.totalorder %s141_s0, %s68_s10  ;;  %s15_s7 = int_to_ptr.vmem [resolvable:$true] %s14_s7 }
   0x3   :  { %p72_p1 = scmp.lt.u32.totalorder %s68_s10, %s141_s0 }
   0x5   :  { %p74_p2 = pnand %p72_p1, %p69_p0 }
   0x7   :  { %77 = shalt.err (!%p74_p2)
}
   0x8   :  { %s78_s15 = scalar_lea.vmem %s15_s7, 128  ;;  %p83_p4 = scmp.lt.s32.totalorder %s15_s7, %s15_s7 }
   0x9   :  { %p79_p3 = scmp.ne.s32.totalorder %s15_s7, %s78_s15  ;;  %p84_p5 = scmp.lt.s32.totalorder %s78_s15, %s78_s15 }
   0xb   :  { %p85_p6 = por %p84_p5, %p83_p4 }
   0xd   :  { %p86_p7 = pnand %p85_p6, %p79_p3 }
   0xf   :  { %89 = shalt.err (!%p86_p7)
}
  0x10   :  { %17 = dma.hbm_to_vmem [thread:$0]  %s141_s0, 128, %s15_s7, [#allocation4]  }
  0x11   :  { %100 = dma.done.wait [#allocation4], 128  }
  0x12   :  { %101 = vsyncadd [#allocation4], 4294967168  ;;  %vm25_vm0 = vcmask 261120   ;;  %v105_v0 = vmov 0.0   ;;  %v27_v1 = vld [vmem:[#allocation3] sm:$0xff]  ;;  %s90_s20 = scalar_lea.hbm %s142_s1, 16 }
  0x13   :  { %26 = vst.msk [vmem:[#allocation2] sm:$0xff] %vm25_vm0, %v105_v0  ;;  %v29_v3 = vmul.f32 %v27_v1, %v27_v1  ;;  %p91_p8 = scmp.ne.s32.totalorder %s142_s1, %s90_s20  ;;  %p94_p9 = scmp.lt.u32.totalorder %s90_s20, %s142_s1 }
  0x15   :  { %p96_p10 = pnand %p94_p9, %p91_p8 }
  0x1a   :  { %v28_v2 = vld [vmem:[#allocation2] sm:$0xff] }
  0x1b   :  { %v30_v4 = vadd.f32 %v29_v3, %v28_v2 }
  0x1d   :  { %32 = vst.msk [vmem:[#allocation2] sm:$0xff] %vm25_vm0, %v30_v4 }
  0x24   :  { %v36_v5 = vld [vmem:[#allocation2] sm:$0xff] }
  0x25   :  { %v37_v6 = vsel %vm25_vm0, %v36_v5, 0.0 }
  0x26   :  { %38 = vadd.xlane.f32.xlu0 %v37_v6 }
  0xb3   :  { %v39_v7 = vpop.xlane.xlu0 %38 }
  0xb4   :  { %v40_v8 = vrot.slane %v39_v7, 4 }
  0xb6   :  { %v41_v9 = vadd.f32 %v40_v8, %v39_v7 }
  0xb8   :  { %v42_v10 = vrot.slane %v41_v9, 2 }
  0xba   :  { %v43_v11 = vadd.f32 %v42_v10, %v41_v9 }
  0xbc   :  { %v44_v12 = vrot.slane %v43_v11, 1 }
  0xbe   :  { %v45_v13 = vadd.f32 %v44_v12, %v43_v11 }
  0xc0   :  { %63 = vpush %v45_v13 }
  0xf1   :  { %s64_s0 = spop %63 }
  0xf2   :  { %48 = sst [smem:[#allocation6]] %s64_s0 }
  0xf3   :  { %99 = shalt.err (!%p96_p10)
}
  0xf4   :  { %s106_s25 = smov [#allocation6]  }
  0xf5   :  { %56 = dma.smem_to_hbm %s106_s25, 16, %s142_s1, [#allocation5]  }
  0xf6   :  { %102 = dma.done.wait [#allocation5], 16  }
  0xf7   :  { %103 = vsyncadd [#allocation5], 4294967280 }
  0xf8   :  { %60 = sfence }
  0xf9   :  { %61 = vsyncpa [#allocation4], 1 }
  0xfa   :  { %62 = vsyncpa [#allocation5], 1 }

</bundles_post_ra>
